<compile_context>
chip_gen: v6e
topology: v6e:2x2x1
jax: 0.10.0
libtpu: 0.0.40
codegen_flags: <defaults>
</compile_context>

<pallas_src>
import functools

import jax
import jax.numpy as jnp
from jax import lax
from jax.experimental import pallas as pl
from jax.experimental.pallas import tpu as pltpu


def _fuse_bn(w_hwio, gamma, beta, mean, var, eps=1e-5):
    """Fold BatchNorm2d (eval) into conv weight (HWIO) + per-channel bias."""
    scale = gamma / jnp.sqrt(var + eps)                 # (Cout,)
    w_fused = w_hwio * scale[None, None, None, :]       # scale output channels
    b_fused = beta - mean * scale                       # (Cout,)
    return w_fused.astype(jnp.float32), b_fused.astype(jnp.float32)


def _band_weights(w_hwio, W):
    """(3,3,Ci,Co) HWIO conv weight -> (3, W*Ci, W*Co) banded row matrices.

    T[dy, wi*Ci+ci, w*Co+co] = w[dy, wi-w+1, ci, co] if 0 <= wi-w+1 < 3 else 0.
    The band folds the 3 dx taps and the horizontal SAME padding into the
    weights, so the kernel only needs one matmul per dy tap on lane-packed rows.
    """
    KH, KW, Ci, Co = w_hwio.shape
    pos = jnp.arange(W)
    # band[dx, wi, w] = 1 where wi == w + dx - 1
    band = (pos[None, :, None] ==
            pos[None, None, :] + jnp.arange(KW)[:, None, None] - 1)
    band = band.astype(jnp.float32)
    t = jnp.einsum('xab,dxio->daibo', band, w_hwio.astype(jnp.float32))
    return t.reshape(KH, W * Ci, W * Co)


def prepare_params(w1_hwio, g1, be1, m1, v1, w2_hwio, g2, be2, m2, v2, W):
    """One-time weight prep (hoisted out of the per-forward path)."""
    w1f, bias1 = _fuse_bn(w1_hwio, g1, be1, m1, v1)
    w2f, bias2 = _fuse_bn(w2_hwio, g2, be2, m2, v2)
    Cmid, Cout = w1f.shape[-1], w2f.shape[-1]
    return dict(
        t1=_band_weights(w1f, W).astype(jnp.bfloat16),   # (3, W*Cin,  W*Cmid)
        t2=_band_weights(w2f, W).astype(jnp.bfloat16),   # (3, W*Cmid, W*Cout)
        b1=jnp.tile(bias1, W).reshape(1, W * Cmid),      # f32 bias rows
        b2=jnp.tile(bias2, W).reshape(1, W * Cout),
    )


def _double_conv_kernel(x_ref, t1_ref, b1_ref, t2_ref, b2_ref, o_ref, *, BH, H):
    # Row index within each image (rows of the B merged images are stacked
    # contiguously along axis 0 of the block).
    row_in_img = lax.broadcasted_iota(jnp.int32, (BH, 1), 0) % H
    is_top = row_in_img == 0          # first row of each image
    is_bot = row_in_img == H - 1      # last row of each image

    def shifted(xf, up):
        # up=True : operand row r holds x[r-1]  (conv tap dy=0)
        # up=False: operand row r holds x[r+1]  (conv tap dy=2)
        r = pltpu.roll(xf, shift=1 if up else BH - 1, axis=0)
        r = jnp.where(is_top if up else is_bot, 0.0, r)   # vertical SAME pad
        return r.astype(jnp.bfloat16)

    def conv_bn_relu(x_bf, t_ref, b_ref):
        xf = x_bf.astype(jnp.float32)        # 32-bit layout for the row rolls
        acc = jnp.dot(shifted(xf, True), t_ref[0],
                      preferred_element_type=jnp.float32)
        acc += jnp.dot(x_bf, t_ref[1], preferred_element_type=jnp.float32)
        acc += jnp.dot(shifted(xf, False), t_ref[2],
                       preferred_element_type=jnp.float32)
        return jnp.maximum(acc + b_ref[...], 0.0)

    y1 = conv_bn_relu(x_ref[...], t1_ref, b1_ref)        # (BH, W*Cmid) f32
    # Dropout2d = identity in eval mode.
    y2 = conv_bn_relu(y1.astype(jnp.bfloat16), t2_ref, b2_ref)
    o_ref[...] = y2.astype(o_ref.dtype)                  # lane-dense store


def _pick_images_per_step(n, h, in_row_bytes, out_row_bytes):
    """Merge images per step so M = B*H approaches ~256 rows, bounded by a
    VMEM budget for the (double-buffered) input/output activation blocks."""
    target_rows = 256
    budget = 8 * 1024 * 1024
    b = min(n, max(1, -(-target_rows // h)))
    while b > 1 and (n % b != 0 or
                     2 * b * h * (in_row_bytes + out_row_bytes) > budget):
        b -= 1
    return b


def _resident_spec(shape):
    """Grid-invariant operand: single resident VMEM buffer (no double buffer)."""
    index_map = lambda n: (0,) * len(shape)
    try:
        return pl.BlockSpec(shape, index_map, pipeline_mode=pl.Buffered(1))
    except (AttributeError, TypeError):   # older BlockSpec signature
        return pl.BlockSpec(shape, index_map)


def double_conv_pallas(x_nhwc, params):
    """x_nhwc: (N,H,W,Cin) f32; params from prepare_params()."""
    N, H, W, Cin = x_nhwc.shape
    t1, t2 = params["t1"], params["t2"]
    b1_row, b2_row = params["b1"], params["b2"]
    Cout = t2.shape[-1] // W

    B = _pick_images_per_step(N, H, W * Cin * 2, W * Cout * 4)
    if (B * H) % 8 != 0 and B != N:
        B = N                    # full-extent block is always layout-legal
    steps = N // B
    BH = B * H

    # Lane-packed bf16 rows (free reshape of the contiguous NHWC input).
    x_rows = x_nhwc.reshape(N * H, W * Cin).astype(jnp.bfloat16)

    kernel = functools.partial(_double_conv_kernel, BH=BH, H=H)

    out2d = pl.pallas_call(
        kernel,
        out_shape=jax.ShapeDtypeStruct((N * H, W * Cout), jnp.float32),
        grid_spec=pltpu.PrefetchScalarGridSpec(
            num_scalar_prefetch=0,
            grid=(steps,),
            in_specs=[
                pl.BlockSpec((BH, W * Cin), lambda n: (n, 0)),
                _resident_spec(t1.shape),
                _resident_spec(b1_row.shape),
                _resident_spec(t2.shape),
                _resident_spec(b2_row.shape),
            ],
            out_specs=pl.BlockSpec((BH, W * Cout), lambda n: (n, 0)),
        ),
        compiler_params=pltpu.CompilerParams(
            dimension_semantics=("parallel",),
            vmem_limit_bytes=64 * 1024 * 1024),
    )(x_rows, t1, b1_row, t2, b2_row)

    return out2d.reshape(N, H, W, Cout)


def double_conv_ref(x_nhwc, w1, b1, w2, b2):
    """Pure-JAX f32 reference (NHWC, HWIO)."""
    dn = ("NHWC", "HWIO", "NHWC")
    y = lax.conv_general_dilated(x_nhwc, w1, (1, 1), "SAME",
                                 dimension_numbers=dn)
    y = jnp.maximum(y + b1[None, None, None, :], 0.0)
    y = lax.conv_general_dilated(y, w2, (1, 1), "SAME",
                                 dimension_numbers=dn)
    y = jnp.maximum(y + b2[None, None, None, :], 0.0)
    return y


if __name__ == "__main__":
    # Module config: DoubleConv(in_channels=4, out_channels=8) -> mid_channels=8
    N, Cin, H, W = 2, 4, 16, 16
    Cmid, Cout = 8, 8

    key = jax.random.PRNGKey(0)
    k = jax.random.split(key, 10)

    # Input in PyTorch NCHW convention, then moved to NHWC for the kernel.
    x_nchw = jax.random.normal(k[0], (N, Cin, H, W), jnp.float32)
    x_nhwc = jnp.transpose(x_nchw, (0, 2, 3, 1))

    # Conv weights (PyTorch OIHW shapes) -> HWIO.
    w1_oihw = jax.random.normal(k[1], (Cmid, Cin, 3, 3), jnp.float32) * 0.2
    w2_oihw = jax.random.normal(k[2], (Cout, Cmid, 3, 3), jnp.float32) * 0.2
    w1_hwio = jnp.transpose(w1_oihw, (2, 3, 1, 0))
    w2_hwio = jnp.transpose(w2_oihw, (2, 3, 1, 0))

    # BatchNorm2d parameters / running stats (eval mode), deterministic.
    g1 = 1.0 + 0.1 * jax.random.normal(k[3], (Cmid,), jnp.float32)
    be1 = 0.1 * jax.random.normal(k[4], (Cmid,), jnp.float32)
    m1 = 0.1 * jax.random.normal(k[5], (Cmid,), jnp.float32)
    v1 = 1.0 + 0.1 * jax.random.uniform(k[6], (Cmid,), jnp.float32)
    g2 = 1.0 + 0.1 * jax.random.normal(k[7], (Cout,), jnp.float32)
    be2 = 0.1 * jax.random.normal(k[8], (Cout,), jnp.float32)
    m2 = 0.1 * jax.random.normal(k[9], (Cout,), jnp.float32)
    v2 = jnp.linspace(0.9, 1.3, Cout, dtype=jnp.float32)

    # One-time weight prep (BN fold, banded weights, bias rows, bf16 casts).
    params = prepare_params(w1_hwio, g1, be1, m1, v1,
                            w2_hwio, g2, be2, m2, v2, W)
    fwd = jax.jit(double_conv_pallas)

    out = jax.block_until_ready(fwd(x_nhwc, params))

    # f32 reference with the same BN-fused weights.
    w1f, b1f = _fuse_bn(w1_hwio, g1, be1, m1, v1)
    w2f, b2f = _fuse_bn(w2_hwio, g2, be2, m2, v2)
    ref = double_conv_ref(x_nhwc, w1f, b1f, w2f, b2f)

    assert out.shape == (N, H, W, Cout)
    # Tolerance relaxed for bf16 MXU operands (f32 accumulation is kept).
    assert jnp.allclose(out, ref, atol=5e-2, rtol=2e-2), (
        float(jnp.max(jnp.abs(out - ref))))

    print("KERNEL_OK")
</pallas_src>

<mosaic_0001>
module attributes {stable_mosaic.version = 11 : i64} {
  func.func @_double_conv_kernel(%arg0: i32, %arg1: memref<32x64xbf16, #tpu.memory_space<vmem>>, %arg2: memref<3x64x128xbf16, #tpu.memory_space<vmem>>, %arg3: memref<1x128xf32, #tpu.memory_space<vmem>>, %arg4: memref<3x128x128xbf16, #tpu.memory_space<vmem>>, %arg5: memref<1x128xf32, #tpu.memory_space<vmem>>, %arg6: memref<32x128xf32, #tpu.memory_space<vmem>>) attributes {dimension_semantics = [#tpu.dimension_semantics<parallel>], iteration_bounds = array<i64: 1>, scalar_prefetch = 0 : i64, scratch_operands = 0 : i64, tpu.core_type = #tpu.core_type<tc>, window_params = [{transform_indices = @transform_0, window_bounds = array<i64: 32, 64>}, {pipeline_mode = #tpu.pipeline_mode<synchronous>, transform_indices = @transform_1, window_bounds = array<i64: 3, 64, 128>}, {pipeline_mode = #tpu.pipeline_mode<synchronous>, transform_indices = @transform_2, window_bounds = array<i64: 1, 128>}, {pipeline_mode = #tpu.pipeline_mode<synchronous>, transform_indices = @transform_3, window_bounds = array<i64: 3, 128, 128>}, {pipeline_mode = #tpu.pipeline_mode<synchronous>, transform_indices = @transform_4, window_bounds = array<i64: 1, 128>}, {transform_indices = @transform_5, window_bounds = array<i64: 32, 128>}]} {
    %0 = tpu.iota {dimensions = array<i32: 0>} : vector<32x1xi32>
    %c16_i32 = arith.constant 16 : i32
    %c0_i32 = arith.constant 0 : i32
    %1 = arith.cmpi eq, %c16_i32, %c0_i32 : i32
    %c1_i32 = arith.constant 1 : i32
    %2 = arith.select %1, %c1_i32, %c16_i32 : i32
    %3 = vector.broadcast %2 : i32 to vector<32x1xi32>
    %4 = arith.remsi %0, %3 : vector<32x1xi32>
    %c0_i32_0 = arith.constant 0 : i32
    %5 = vector.broadcast %c0_i32_0 : i32 to vector<32x1xi32>
    %6 = arith.cmpi ne, %4, %5 : vector<32x1xi32>
    %c0_i32_1 = arith.constant 0 : i32
    %7 = vector.broadcast %c0_i32_1 : i32 to vector<32x1xi32>
    %8 = arith.cmpi slt, %4, %7 : vector<32x1xi32>
    %c0_i32_2 = arith.constant 0 : i32
    %9 = arith.cmpi slt, %2, %c0_i32_2 : i32
    %10 = vector.broadcast %9 : i1 to vector<32x1xi1>
    %11 = vector.broadcast %10 : vector<32x1xi1> to vector<32x1xi1>
    %12 = arith.xori %8, %11 : vector<32x1xi1>
    %13 = arith.andi %12, %6 : vector<32x1xi1>
    %14 = vector.broadcast %2 : i32 to vector<32x1xi32>
    %15 = arith.addi %4, %14 : vector<32x1xi32>
    %16 = arith.select %13, %15, %4 : vector<32x1xi1>, vector<32x1xi32>
    %c0_i32_3 = arith.constant 0 : i32
    %17 = vector.broadcast %c0_i32_3 : i32 to vector<32x1xi32>
    %18 = arith.cmpi eq, %16, %17 : vector<32x1xi32>
    %c15_i32 = arith.constant 15 : i32
    %19 = vector.broadcast %c15_i32 : i32 to vector<32x1xi32>
    %20 = arith.cmpi eq, %16, %19 : vector<32x1xi32>
    %c0 = arith.constant 0 : index
    %c0_4 = arith.constant 0 : index
    %21 = vector.load %arg1[%c0, %c0_4] : memref<32x64xbf16, #tpu.memory_space<vmem>>, vector<32x64xbf16>
    %22 = arith.extf %21 : vector<32x64xbf16> to vector<32x64xf32>
    %c1_i32_5 = arith.constant 1 : i32
    %23 = tpu.dynamic_rotate %22 by %c1_i32_5 dim 0 : vector<32x64xf32>, i32 -> vector<32x64xf32>
    %cst = arith.constant 0.000000e+00 : f32
    %24 = vector.shape_cast %18 : vector<32x1xi1> to vector<32x1xi1>
    %25 = vector.broadcast %24 : vector<32x1xi1> to vector<32x64xi1>
    %26 = vector.broadcast %cst : f32 to vector<32x64xf32>
    %27 = arith.select %25, %26, %23 : vector<32x64xi1>, vector<32x64xf32>
    %28 = arith.truncf %27 : vector<32x64xf32> to vector<32x64xbf16>
    %c0_6 = arith.constant 0 : index
    %c0_7 = arith.constant 0 : index
    %c0_8 = arith.constant 0 : index
    %29 = vector.load %arg2[%c0_6, %c0_7, %c0_8] : memref<3x64x128xbf16, #tpu.memory_space<vmem>>, vector<1x64x128xbf16>
    %30 = vector.shape_cast %29 : vector<1x64x128xbf16> to vector<64x128xbf16>
    %cst_9 = arith.constant dense<0.000000e+00> : vector<32x128xf32>
    %31 = tpu.matmul %28, %30, %cst_9 {dimension_numbers = #tpu.dot_dimension_numbers<[1], [0], [0], [1], [0, 0, 1, 1], [], []>} : vector<32x64xbf16>, vector<64x128xbf16>, vector<32x128xf32> -> vector<32x128xf32>
    %c1 = arith.constant 1 : index
    %c0_10 = arith.constant 0 : index
    %c0_11 = arith.constant 0 : index
    %32 = vector.load %arg2[%c1, %c0_10, %c0_11] : memref<3x64x128xbf16, #tpu.memory_space<vmem>>, vector<1x64x128xbf16>
    %33 = vector.shape_cast %32 : vector<1x64x128xbf16> to vector<64x128xbf16>
    %cst_12 = arith.constant dense<0.000000e+00> : vector<32x128xf32>
    %34 = tpu.matmul %21, %33, %cst_12 {dimension_numbers = #tpu.dot_dimension_numbers<[1], [0], [0], [1], [0, 0, 1, 1], [], []>} : vector<32x64xbf16>, vector<64x128xbf16>, vector<32x128xf32> -> vector<32x128xf32>
    %35 = arith.addf %31, %34 : vector<32x128xf32>
    %c31_i32 = arith.constant 31 : i32
    %36 = tpu.dynamic_rotate %22 by %c31_i32 dim 0 : vector<32x64xf32>, i32 -> vector<32x64xf32>
    %cst_13 = arith.constant 0.000000e+00 : f32
    %37 = vector.shape_cast %20 : vector<32x1xi1> to vector<32x1xi1>
    %38 = vector.broadcast %37 : vector<32x1xi1> to vector<32x64xi1>
    %39 = vector.broadcast %cst_13 : f32 to vector<32x64xf32>
    %40 = arith.select %38, %39, %36 : vector<32x64xi1>, vector<32x64xf32>
    %41 = arith.truncf %40 : vector<32x64xf32> to vector<32x64xbf16>
    %c2 = arith.constant 2 : index
    %c0_14 = arith.constant 0 : index
    %c0_15 = arith.constant 0 : index
    %42 = vector.load %arg2[%c2, %c0_14, %c0_15] : memref<3x64x128xbf16, #tpu.memory_space<vmem>>, vector<1x64x128xbf16>
    %43 = vector.shape_cast %42 : vector<1x64x128xbf16> to vector<64x128xbf16>
    %cst_16 = arith.constant dense<0.000000e+00> : vector<32x128xf32>
    %44 = tpu.matmul %41, %43, %cst_16 {dimension_numbers = #tpu.dot_dimension_numbers<[1], [0], [0], [1], [0, 0, 1, 1], [], []>} : vector<32x64xbf16>, vector<64x128xbf16>, vector<32x128xf32> -> vector<32x128xf32>
    %45 = arith.addf %35, %44 : vector<32x128xf32>
    %c0_17 = arith.constant 0 : index
    %c0_18 = arith.constant 0 : index
    %46 = vector.load %arg3[%c0_17, %c0_18] : memref<1x128xf32, #tpu.memory_space<vmem>>, vector<1x128xf32>
    %47 = vector.broadcast %46 : vector<1x128xf32> to vector<32x128xf32>
    %48 = arith.addf %45, %47 : vector<32x128xf32>
    %cst_19 = arith.constant 0.000000e+00 : f32
    %49 = vector.broadcast %cst_19 : f32 to vector<32x128xf32>
    %50 = arith.maximumf %48, %49 : vector<32x128xf32>
    %51 = arith.truncf %50 : vector<32x128xf32> to vector<32x128xbf16>
    %52 = arith.extf %51 : vector<32x128xbf16> to vector<32x128xf32>
    %c1_i32_20 = arith.constant 1 : i32
    %53 = tpu.dynamic_rotate %52 by %c1_i32_20 dim 0 : vector<32x128xf32>, i32 -> vector<32x128xf32>
    %cst_21 = arith.constant 0.000000e+00 : f32
    %54 = vector.shape_cast %18 : vector<32x1xi1> to vector<32x1xi1>
    %55 = vector.broadcast %54 : vector<32x1xi1> to vector<32x128xi1>
    %56 = vector.broadcast %cst_21 : f32 to vector<32x128xf32>
    %57 = arith.select %55, %56, %53 : vector<32x128xi1>, vector<32x128xf32>
    %58 = arith.truncf %57 : vector<32x128xf32> to vector<32x128xbf16>
    %c0_22 = arith.constant 0 : index
    %c0_23 = arith.constant 0 : index
    %c0_24 = arith.constant 0 : index
    %59 = vector.load %arg4[%c0_22, %c0_23, %c0_24] : memref<3x128x128xbf16, #tpu.memory_space<vmem>>, vector<1x128x128xbf16>
    %60 = vector.shape_cast %59 : vector<1x128x128xbf16> to vector<128x128xbf16>
    %cst_25 = arith.constant dense<0.000000e+00> : vector<32x128xf32>
    %61 = tpu.matmul %58, %60, %cst_25 {dimension_numbers = #tpu.dot_dimension_numbers<[1], [0], [0], [1], [0, 0, 1, 1], [], []>} : vector<32x128xbf16>, vector<128x128xbf16>, vector<32x128xf32> -> vector<32x128xf32>
    %c1_26 = arith.constant 1 : index
    %c0_27 = arith.constant 0 : index
    %c0_28 = arith.constant 0 : index
    %62 = vector.load %arg4[%c1_26, %c0_27, %c0_28] : memref<3x128x128xbf16, #tpu.memory_space<vmem>>, vector<1x128x128xbf16>
    %63 = vector.shape_cast %62 : vector<1x128x128xbf16> to vector<128x128xbf16>
    %cst_29 = arith.constant dense<0.000000e+00> : vector<32x128xf32>
    %64 = tpu.matmul %51, %63, %cst_29 {dimension_numbers = #tpu.dot_dimension_numbers<[1], [0], [0], [1], [0, 0, 1, 1], [], []>} : vector<32x128xbf16>, vector<128x128xbf16>, vector<32x128xf32> -> vector<32x128xf32>
    %65 = arith.addf %61, %64 : vector<32x128xf32>
    %c31_i32_30 = arith.constant 31 : i32
    %66 = tpu.dynamic_rotate %52 by %c31_i32_30 dim 0 : vector<32x128xf32>, i32 -> vector<32x128xf32>
    %cst_31 = arith.constant 0.000000e+00 : f32
    %67 = vector.shape_cast %20 : vector<32x1xi1> to vector<32x1xi1>
    %68 = vector.broadcast %67 : vector<32x1xi1> to vector<32x128xi1>
    %69 = vector.broadcast %cst_31 : f32 to vector<32x128xf32>
    %70 = arith.select %68, %69, %66 : vector<32x128xi1>, vector<32x128xf32>
    %71 = arith.truncf %70 : vector<32x128xf32> to vector<32x128xbf16>
    %c2_32 = arith.constant 2 : index
    %c0_33 = arith.constant 0 : index
    %c0_34 = arith.constant 0 : index
    %72 = vector.load %arg4[%c2_32, %c0_33, %c0_34] : memref<3x128x128xbf16, #tpu.memory_space<vmem>>, vector<1x128x128xbf16>
    %73 = vector.shape_cast %72 : vector<1x128x128xbf16> to vector<128x128xbf16>
    %cst_35 = arith.constant dense<0.000000e+00> : vector<32x128xf32>
    %74 = tpu.matmul %71, %73, %cst_35 {dimension_numbers = #tpu.dot_dimension_numbers<[1], [0], [0], [1], [0, 0, 1, 1], [], []>} : vector<32x128xbf16>, vector<128x128xbf16>, vector<32x128xf32> -> vector<32x128xf32>
    %75 = arith.addf %65, %74 : vector<32x128xf32>
    %c0_36 = arith.constant 0 : index
    %c0_37 = arith.constant 0 : index
    %76 = vector.load %arg5[%c0_36, %c0_37] : memref<1x128xf32, #tpu.memory_space<vmem>>, vector<1x128xf32>
    %77 = vector.broadcast %76 : vector<1x128xf32> to vector<32x128xf32>
    %78 = arith.addf %75, %77 : vector<32x128xf32>
    %cst_38 = arith.constant 0.000000e+00 : f32
    %79 = vector.broadcast %cst_38 : f32 to vector<32x128xf32>
    %80 = arith.maximumf %78, %79 : vector<32x128xf32>
    %c0_39 = arith.constant 0 : index
    %c0_40 = arith.constant 0 : index
    %81 = vector.load %arg6[%c0_39, %c0_40] : memref<32x128xf32, #tpu.memory_space<vmem>>, vector<32x128xf32>
    tpu.vector_store %arg6[%c0_39, %c0_40], %80 {strides = array<i32>} : memref<32x128xf32, #tpu.memory_space<vmem>>, vector<32x128xf32>,
    return
  }
  func.func @transform_0(%arg0: i32) -> (i32, i32) {
    %c0_i32 = arith.constant 0 : i32
    %c0_i32_0 = arith.constant 0 : i32
    return %arg0, %c0_i32 : i32, i32
  }
  func.func @transform_1(%arg0: i32) -> (i32, i32, i32) {
    %c0_i32 = arith.constant 0 : i32
    %c0_i32_0 = arith.constant 0 : i32
    %c0_i32_1 = arith.constant 0 : i32
    %c0_i32_2 = arith.constant 0 : i32
    return %c0_i32, %c0_i32_0, %c0_i32_1 : i32, i32, i32
  }
  func.func @transform_2(%arg0: i32) -> (i32, i32) {
    %c0_i32 = arith.constant 0 : i32
    %c0_i32_0 = arith.constant 0 : i32
    %c0_i32_1 = arith.constant 0 : i32
    return %c0_i32, %c0_i32_0 : i32, i32
  }
  func.func @transform_3(%arg0: i32) -> (i32, i32, i32) {
    %c0_i32 = arith.constant 0 : i32
    %c0_i32_0 = arith.constant 0 : i32
    %c0_i32_1 = arith.constant 0 : i32
    %c0_i32_2 = arith.constant 0 : i32
    return %c0_i32, %c0_i32_0, %c0_i32_1 : i32, i32, i32
  }
  func.func @transform_4(%arg0: i32) -> (i32, i32) {
    %c0_i32 = arith.constant 0 : i32
    %c0_i32_0 = arith.constant 0 : i32
    %c0_i32_1 = arith.constant 0 : i32
    return %c0_i32, %c0_i32_0 : i32, i32
  }
  func.func @transform_5(%arg0: i32) -> (i32, i32) {
    %c0_i32 = arith.constant 0 : i32
    %c0_i32_0 = arith.constant 0 : i32
    return %arg0, %c0_i32 : i32, i32
  }
}

</mosaic_0001>

<bundles_post_ra>
// kernel: double_conv_pallas.1
= control target key start
LH: loop header
LB: loop body
LE: loop exit
PB: predicated region body
PF: predicated region fallthrough
CT: control target
= control target key end

     0   :  { %v21_v0 = vlaneseq  ;;  %vm164_vm0 = vcmask 523264   ;;  %vm1126_vm10 = vmmov 1   ;;  %s1377_s1 = inlined_call_operand.vmem [shape: bf16[3,64,128], index: 1, kind: input, shape index: {}]   ;;  %s1378_s0 = inlined_call_operand.vmem [shape: bf16[32,64], index: 0, kind: input, shape index: {}]   ;;  %s1379_s3 = inlined_call_operand.vmem [shape: bf16[3,128,128], index: 3, kind: input, shape index: {}]   ;;  %s1380_s2 = inlined_call_operand.vmem [shape: f32[1,128], index: 2, kind: input, shape index: {}]   ;;  %s1381_s4 = inlined_call_operand.vmem [shape: f32[1,128], index: 4, kind: input, shape index: {}]   ;;  %s1382_s5 = inlined_call_operand.vmem [shape: f32[32,128], index: 5, kind: output, shape index: {}]  }
   0x1   :  { %v1086_v1 = vld [vmem:[%s1377_s1 + $0x38] sm:$0xff]   ;;  %v1088_v4 = vld [vmem:[%s1377_s1 + $0x30] sm:$0xff]   ;;  %v1090_v7 = vld [vmem:[%s1377_s1 + $0x28] sm:$0xff]  }
   0x2   :  { %v1087_v2 = vld [vmem:[%s1377_s1 + $0x18] sm:$0xff]   ;;  %v1163_v3 = vshrl.u32 %v21_v0, 7  ;;  %989 = vmatprep.subr.bf16.mxu0 %v1086_v1  ;;  %v1089_v5 = vld [vmem:[%s1377_s1 + $0x10] sm:$0xff]   ;;  %v1091_v8 = vld [vmem:[%s1377_s1 + $0x8] sm:$0xff]  }
   0x3   :  { %1001 = vmatprep.subr.bf16.mxu1 %v1087_v2  ;;  %990 = vmatpush3.bf16.msra.mxu0 %v1086_v1  ;;  %v1092_v11 = vld [vmem:[%s1377_s1 + $0x20] sm:$0xff]   ;;  %v85_v15 = vld [vmem:[%s1378_s0 + $0x8] sm:$0xff]   ;;  %v1096_v31 = vld [vmem:[%s1377_s1 + $0x58] sm:$0xff]  }
   0x4   :  { %v25_v6 = vadd.s32 24, %v1163_v3  ;;  %1002 = vmatpush3.bf16.msra.mxu1 %v1087_v2  ;;  %991 = vmatprep.subr.bf16.mxu0 %v1088_v4  ;;  %v30_v10 = vand.u32 15, %v1163_v3  ;;  %vm303_vm1 = vcmp.lt.s32.totalorder %v1163_v3, 7  ;;  %v1093_v12 = vld [vmem:[%s1377_s1] sm:$0xff]   ;;  %v24_v17 = vadd.s32 16, %v1163_v3  ;;  %v1100_v39 = vld [vmem:[%s1379_s3 + $0x78] sm:$0xff]  }
   0x5   :  { %1003 = vmatprep.subr.bf16.mxu1 %v1089_v5  ;;  %v82_v14 = vld [vmem:[%s1378_s0] sm:$0xff]   ;;  %v89_v20 = vunpack.c.h.bf16 %v85_v15  ;;  %vm94_vm4 = vcmp.lt.s32.totalorder %v1163_v3, 1  ;;  %v88_v21 = vunpack.c.l.bf16 %v85_v15  ;;  %v23_v34 = vadd.s32 8, %v1163_v3  ;;  %v1097_v43 = vld [vmem:[%s1377_s1 + $0x50] sm:$0xff]   ;;  %v1098_v50 = vld [vmem:[%s1377_s1 + $0x48] sm:$0xff]  }
   0x6   :  { %v51_v9 = vand.u32 15, %v25_v6  ;;  %vm1196_vm3 = vcmp.eq.s32.totalorder %v30_v10, 0  ;;  %v86_v18 = vunpack.c.l.bf16 %v82_v14  ;;  %v87_v19 = vunpack.c.h.bf16 %v82_v14  ;;  %997 = vmatprep.mubr.msk.bf16.mxu0 %vm164_vm0, %v82_v14  ;;  %v1099_v53 = vld [vmem:[%s1377_s1 + $0x40] sm:$0xff]   ;;  %v1101_v56 = vld [vmem:[%s1379_s3 + $0x70] sm:$0xff]   ;;  %v1102_v57 = vld [vmem:[%s1379_s3 + $0x38] sm:$0xff]  }
   0x7   :  { %992 = vmatpush3.bf16.msra.mxu0 %v1088_v4  ;;  %v44_v22 = vand.u32 15, %v24_v17  ;;  %v302_v27 = vrot.slane %v89_v20, 1  ;;  %v93_v28 = vrot.slane %v89_v20, 7  ;;  %v92_v29 = vrot.slane %v88_v21, 7  ;;  %v1103_v58 = vld [vmem:[%s1379_s3 + $0x68] sm:$0xff]   ;;  %v1104_v59 = vld [vmem:[%s1379_s3 + $0x30] sm:$0xff]   ;;  %vm900_vm7 = vmneg %vm1196_vm3 }
   0x8   :  { %1004 = vmatpush3.bf16.msra.mxu1 %v1089_v5  ;;  %993 = vmatprep.subr.bf16.mxu0 %v1090_v7  ;;  %vm1186_vm2 = vcmp.eq.s32.totalorder %v51_v9, 15  ;;  %v90_v23 = vrot.slane %v86_v18, 7  ;;  %v91_v24 = vrot.slane %v87_v19, 7  ;;  %v299_v25 = vrot.slane %v86_v18, 1  ;;  %v1105_v60 = vld [vmem:[%s1379_s3 + $0x60] sm:$0xff]   ;;  %v1106_v61 = vld [vmem:[%s1379_s3 + $0x28] sm:$0xff]   ;;  %vm901_vm11 = vmpackc.low %vm1126_vm10, %vm900_vm7 }
   0x9   :  { %1005 = vmatprep.subr.bf16.mxu1 %v1091_v8  ;;  %v300_v26 = vrot.slane %v87_v19, 1  ;;  %v301_v30 = vrot.slane %v88_v21, 1  ;;  %vm1208_vm5 = vcmp.eq.s32.totalorder %v44_v22, 0  ;;  %v95_v36 = vsel %vm94_vm4, %v92_v29, %v93_v28  ;;  %v1107_v62 = vld [vmem:[%s1379_s3 + $0x58] sm:$0xff]   ;;  %v1108_v63 = vld [vmem:[%s1379_s3 + $0x20] sm:$0xff]   ;;  %v1109_v0 = vld [vmem:[%s1379_s3 + $0x50] sm:$0xff]  }
   0xa   :  { %v97_v32 = vsel %vm94_vm4, %v90_v23, %v91_v24  ;;  %v98_v35 = vsel %vm94_vm4, %v93_v28, %v90_v23  ;;  %v96_v37 = vsel %vm94_vm4, %v91_v24, %v92_v29  ;;  %v307_v40 = vsel %vm303_vm1, %v302_v27, %v299_v25  ;;  %v1110_v1 = vld [vmem:[%s1379_s3 + $0x18] sm:$0xff]   ;;  %v1111_v2 = vld [vmem:[%s1379_s3 + $0x48] sm:$0xff]   ;;  %v1112_v4 = vld [vmem:[%s1379_s3 + $0x10] sm:$0xff]  }
   0xb   :  { %994 = vmatpush3.bf16.msra.mxu0 %v1090_v7  ;;  %v306_v38 = vsel %vm303_vm1, %v299_v25, %v300_v26  ;;  %v107_v41 = vsel %vm1196_vm3, 0.0, %v98_v35  ;;  %v109_v42 = vsel %vm1208_vm5, 0.0, %v96_v37  ;;  %v37_v44 = vand.u32 15, %v23_v34  ;;  %v1113_v5 = vld [vmem:[%s1379_s3 + $0x40] sm:$0xff]   ;;  %v1114_v6 = vld [vmem:[%s1379_s3 + $0x8] sm:$0xff]   ;;  %vm904_vm9 = vmneg %vm1208_vm5 }
   0xc   :  { %1006 = vmatpush3.bf16.msra.mxu1 %v1091_v8  ;;  %995 = vmatprep.subr.bf16.mxu0 %v1092_v11  ;;  %v111_v45 = vpack.c.bf16 %v97_v32, %v107_v41  ;;  %v112_v46 = vpack.c.bf16 %v95_v36, %v109_v42  ;;  %v305_v47 = vsel %vm303_vm1, %v300_v26, %v301_v30  ;;  %v319_v49 = vsel %vm1186_vm2, 0.0, %v307_v40  ;;  %v1115_v7 = vld [vmem:[%s1379_s3] sm:$0xff]   ;;  %v1116_v8 = vld [vmem:[%s1379_s3 + $0xb8] sm:$0xff]   ;;  %vm905_vm13 = vmpackc.low %vm1126_vm10, %vm904_vm9 }
   0xd   :  { %1007 = vmatprep.subr.bf16.mxu1 %v1093_v12  ;;  %vm1235_vm6 = vcmp.eq.s32.totalorder %v37_v44, 15  ;;  %v304_v54 = vsel %vm303_vm1, %v301_v30, %v302_v27  ;;  %v867_v22 = vld [vmem:[%s1380_s2] ss:$0 sm:$0xff]  ;;  %v1118_v48 = vld [vmem:[%s1379_s3 + $0xa8] sm:$0xff]   ;;  %v1120_v33 = vld [vmem:[%s1379_s3 + $0x98] sm:$0xff]  }
   0xe   :  { %1009 = vmatprep.mubr.msk.bf16.mxu1 %vm164_vm0, %v111_v45  ;;  %v317_v51 = vsel %vm1235_vm6, 0.0, %v305_v47  ;;  %v321_v55 = vpack.c.bf16 %v319_v49, %v304_v54  ;;  %vm932_vm8 = vmneg %vm1235_vm6 }
   0xf   :  { %996 = vmatpush3.bf16.msra.mxu0 %v1092_v11  ;;  %v320_v52 = vpack.c.bf16 %v317_v51, %v306_v38  ;;  %vm933_vm12 = vmpackc.low %vm932_vm8, %vm1126_vm10 }
  0x10   :  { %1008 = vmatpush3.bf16.msra.mxu1 %v1093_v12  ;;  %1013 = vmatprep.subr.bf16.mxu0 %v1096_v31  ;;  %vm936_vm14 = vmneg %vm1186_vm2 }
  0x11   :  { %1025 = vmatprep.subr.bf16.mxu1 %v1100_v39  ;;  %vm937_vm15 = vmpackc.low %vm936_vm14, %vm1126_vm10 }
  0x12   :  { %998 = vmatmul.mubr.msk.bf16.vlgmr.msra.gmra.mxu0 %vm164_vm0, %v85_v15 }
  0x13   :  { %1010 = vmatmul.mubr.msk.bf16.vlgmr.msra.gmra.mxu1 %vm164_vm0, %v112_v46  ;;  %1014 = vmatpush3.bf16.msra.mxu0 %v1096_v31 }
  0x14   :  { %1015 = vmatprep.subr.bf16.mxu0 %v1097_v43  ;;  %1026 = vmatpush3.bf16.msra.mxu1 %v1100_v39 }
  0x15   :  { %1021 = vmatprep.mubr.msk.bf16.mxu0 %vm164_vm0, %v320_v52  ;;  %1027 = vmatprep.subr.bf16.mxu1 %v1101_v56 }
  0x17   :  { %1016 = vmatpush3.bf16.msra.mxu0 %v1097_v43 }
  0x18   :  { %1017 = vmatprep.subr.bf16.mxu0 %v1098_v50  ;;  %1028 = vmatpush3.bf16.msra.mxu1 %v1101_v56  ;;  %v1117_v56 = vld [vmem:[%s1379_s3 + $0xb0] sm:$0xff]  }
  0x19   :  { %1029 = vmatprep.subr.bf16.mxu1 %v1103_v58 }
  0x1b   :  { %1018 = vmatpush3.bf16.msra.mxu0 %v1098_v50 }
  0x1c   :  { %1019 = vmatprep.subr.bf16.mxu0 %v1099_v53  ;;  %1030 = vmatpush3.bf16.msra.mxu1 %v1103_v58 }
  0x1d   :  { %1031 = vmatprep.subr.bf16.mxu1 %v1105_v60 }
  0x1f   :  { %1020 = vmatpush3.bf16.msra.mxu0 %v1099_v53 }
  0x20   :  { %1045 = vmatprep.subr.bf16.mxu0 %v1102_v57  ;;  %1032 = vmatpush3.bf16.msra.mxu1 %v1105_v60  ;;  %v1119_v60 = vld [vmem:[%s1379_s3 + $0xa0] sm:$0xff]  }
  0x21   :  { %1033 = vmatprep.subr.bf16.mxu1 %v1107_v62 }
  0x22   :  { %1022 = vmatmul.mubr.msk.bf16.vlgmr.msra.gmra.mxu0 %vm164_vm0, %v321_v55 }
  0x23   :  { %1046 = vmatpush3.bf16.msra.mxu0 %v1102_v57 }
  0x24   :  { %1047 = vmatprep.subr.bf16.mxu0 %v1104_v59  ;;  %1034 = vmatpush3.bf16.msra.mxu1 %v1107_v62  ;;  %v1122_v62 = vld [vmem:[%s1379_s3 + $0x88] sm:$0xff]  }
  0x25   :  { %1035 = vmatprep.subr.bf16.mxu1 %v1109_v0 }
  0x27   :  { %1048 = vmatpush3.bf16.msra.mxu0 %v1104_v59 }
  0x28   :  { %1049 = vmatprep.subr.bf16.mxu0 %v1106_v61  ;;  %1036 = vmatpush3.bf16.msra.mxu1 %v1109_v0 }
  0x29   :  { %1037 = vmatprep.subr.bf16.mxu1 %v1111_v2 }
  0x2b   :  { %1050 = vmatpush3.bf16.msra.mxu0 %v1106_v61  ;;  %v1121_v61 = vld [vmem:[%s1379_s3 + $0x90] sm:$0xff]  }
  0x2c   :  { %1051 = vmatprep.subr.bf16.mxu0 %v1108_v63  ;;  %1038 = vmatpush3.bf16.msra.mxu1 %v1111_v2 }
  0x2d   :  { %1039 = vmatprep.subr.bf16.mxu1 %v1113_v5 }
  0x2f   :  { %1052 = vmatpush3.bf16.msra.mxu0 %v1108_v63  ;;  %v1123_v63 = vld [vmem:[%s1379_s3 + $0x80] sm:$0xff]  }
  0x30   :  { %1053 = vmatprep.subr.bf16.mxu0 %v1110_v1  ;;  %1040 = vmatpush3.bf16.msra.mxu1 %v1113_v5 }
  0x31   :  { %1065 = vmatprep.subr.bf16.mxu1 %v1116_v8 }
  0x33   :  { %1054 = vmatpush3.bf16.msra.mxu0 %v1110_v1 }
  0x34   :  { %1055 = vmatprep.subr.bf16.mxu0 %v1112_v4 }
  0x37   :  { %1056 = vmatpush3.bf16.msra.mxu0 %v1112_v4 }
  0x38   :  { %1057 = vmatprep.subr.bf16.mxu0 %v1114_v6 }
  0x3b   :  { %1058 = vmatpush3.bf16.msra.mxu0 %v1114_v6 }
  0x3c   :  { %1059 = vmatprep.subr.bf16.mxu0 %v1115_v7 }
  0x3f   :  { %1060 = vmatpush3.bf16.msra.mxu0 %v1115_v7 }
  0xd2   :  { %v999_v9 = vpop.f32.mrf.mxu0 }
  0xd3   :  { %v1011_v11 = vpop.f32.mrf.mxu1 }
  0xd4   :  { %v205_v10 = vpop.f32.mrf.mxu0  ;;  %v293_v17 = vadd.f32 %v1011_v11, %v999_v9 }
  0xd5   :  { %v284_v14 = vpop.f32.mrf.mxu1 }
  0xd6   :  { %v1000_v12 = vpop.f32.mrf.mxu0  ;;  %v285_v20 = vadd.f32 %v284_v14, %v205_v10  ;;  %v940_v14 = vld [vmem:[%s1381_s4] ss:$0 sm:$0xff] }
  0xd7   :  { %v1012_v18 = vpop.f32.mrf.mxu1 }
  0xd8   :  { %v208_v15 = vpop.f32.mrf.mxu0  ;;  %v296_v24 = vadd.f32 %v1012_v18, %v1000_v12 }
  0xd9   :  { %v287_v25 = vpop.f32.mrf.mxu1 }
  0xda   :  { %v288_v31 = vadd.f32 %v287_v25, %v208_v15 }
  0xe2   :  { %v1023_v19 = vpop.f32.mrf.mxu0 }
  0xe3   :  { %v412_v21 = vadd.f32 %v1023_v19, %v293_v17 }
  0xe4   :  { %v395_v23 = vpop.f32.mrf.mxu0 }
  0xe5   :  { %v410_v26 = vadd.f32 %v395_v23, %v285_v20  ;;  %v423_v28 = vadd.f32 %v867_v22, %v412_v21 }
  0xe6   :  { %v1024_v27 = vpop.f32.mrf.mxu0 }
  0xe7   :  { %v421_v29 = vadd.f32 %v867_v22, %v410_v26  ;;  %v413_v30 = vadd.f32 %v1024_v27, %v296_v24  ;;  %v427_v36 = vmax.f32 %v423_v28, 0.0 }
  0xe8   :  { %v398_v32 = vpop.f32.mrf.mxu0 }
  0xe9   :  { %v424_v34 = vadd.f32 %v867_v22, %v413_v30  ;;  %v411_v35 = vadd.f32 %v398_v32, %v288_v31  ;;  %v425_v37 = vmax.f32 %v421_v29, 0.0  ;;  %v437_v42 = vrot.slane %v427_v36, 7 }
  0xea   :  { %v678_v43 = vrot.slane %v427_v36, 1 }
  0xeb   :  { %v428_v38 = vmax.f32 %v424_v34, 0.0  ;;  %v422_v39 = vadd.f32 %v867_v22, %v411_v35  ;;  %v435_v44 = vrot.slane %v425_v37, 7  ;;  %v676_v45 = vrot.slane %v425_v37, 1 }
  0xed   :  { %v438_v40 = vrot.slane %v428_v38, 7  ;;  %v426_v41 = vmax.f32 %v422_v39, 0.0  ;;  %v430_v51 = vpack.c.bf16 %v428_v38, %v427_v36  ;;  %v679_v0 = vrot.slane %v428_v38, 1 }
  0xef   :  { %v436_v46 = vrot.slane %v426_v41, 7  ;;  %v677_v47 = vrot.slane %v426_v41, 1  ;;  %v429_v49 = vpack.c.bf16 %v426_v41, %v425_v37  ;;  %v439_v50 = vsel %vm94_vm4, %v437_v42, %v438_v40 }
  0xf0   :  { %v442_v16 = vsel %vm94_vm4, %v438_v40, %v435_v44  ;;  %v680_v1 = vsel %vm303_vm1, %v678_v43, %v679_v0  ;;  %v683_v2 = vsel %vm303_vm1, %v679_v0, %v676_v45 }
  0xf1   :  { %v440_v52 = vsel %vm94_vm4, %v436_v46, %v437_v42  ;;  %1041 = vmatprep.mubr.bf16.mxu1 %v429_v49  ;;  %v441_v53 = vsel %vm94_vm4, %v435_v44, %v436_v46  ;;  %v681_v54 = vsel %vm303_vm1, %v677_v47, %v678_v43  ;;  %v682_v55 = vsel %vm303_vm1, %v676_v45, %v677_v47 }
  0xf2   :  { %1042 = vmatmul.mubr.bf16.vlgmr.msra.gmra.mxu1 %v430_v51  ;;  %v902_v57 = vpack.c.bf16 %v441_v53, %v442_v16  ;;  %v934_v58 = vpack.c.bf16 %v681_v54, %v682_v55  ;;  %v906_v59 = vpack.c.bf16 %v439_v50, %v440_v52  ;;  %v938_v4 = vpack.c.bf16 %v683_v2, %v680_v1 }
  0xf3   :  { %1066 = vmatpush3.bf16.msra.mxu1 %v1116_v8 }
  0xf4   :  { %1061 = vmatprep.mubr.msk.bf16.mxu0 %vm901_vm11, %v902_v57  ;;  %1081 = vmatprep.mubr.msk.bf16.mxu1 %vm933_vm12, %v934_v58 }
  0xf5   :  { %1062 = vmatmul.mubr.msk.bf16.vlgmr.msra.gmra.mxu0 %vm905_vm13, %v906_v59  ;;  %1067 = vmatprep.subr.bf16.mxu1 %v1117_v56 }
  0xf7   :  { %1068 = vmatpush3.bf16.msra.mxu1 %v1117_v56 }
  0xf8   :  { %1069 = vmatprep.subr.bf16.mxu1 %v1118_v48 }
  0xfb   :  { %1070 = vmatpush3.bf16.msra.mxu1 %v1118_v48 }
  0xfc   :  { %1071 = vmatprep.subr.bf16.mxu1 %v1119_v60 }
  0xff   :  { %1072 = vmatpush3.bf16.msra.mxu1 %v1119_v60 }
 0x100   :  { %1073 = vmatprep.subr.bf16.mxu1 %v1120_v33 }
 0x103   :  { %1074 = vmatpush3.bf16.msra.mxu1 %v1120_v33 }
 0x104   :  { %1075 = vmatprep.subr.bf16.mxu1 %v1121_v61 }
 0x107   :  { %1076 = vmatpush3.bf16.msra.mxu1 %v1121_v61 }
 0x108   :  { %1077 = vmatprep.subr.bf16.mxu1 %v1122_v62 }
 0x10b   :  { %1078 = vmatpush3.bf16.msra.mxu1 %v1122_v62 }
 0x10c   :  { %1079 = vmatprep.subr.bf16.mxu1 %v1123_v63 }
 0x10f   :  { %1080 = vmatpush3.bf16.msra.mxu1 %v1123_v63 }
 0x112   :  { %1082 = vmatmul.mubr.msk.bf16.vlgmr.msra.gmra.mxu1 %vm937_vm15, %v938_v4 }
 0x1b2   :  { %v1043_v5 = vpop.f32.mrf.mxu1 }
 0x1b4   :  { %v564_v6 = vpop.f32.mrf.mxu1 }
 0x1b5   :  { %v1063_v7 = vpop.f32.mrf.mxu0 }
 0x1b6   :  { %v1044_v8 = vpop.f32.mrf.mxu1  ;;  %v670_v13 = vadd.f32 %v1063_v7, %v1043_v5 }
 0x1b7   :  { %v661_v9 = vpop.f32.mrf.mxu0 }
 0x1b8   :  { %v567_v10 = vpop.f32.mrf.mxu1  ;;  %v662_v3 = vadd.f32 %v661_v9, %v564_v6 }
 0x1b9   :  { %v1064_v11 = vpop.f32.mrf.mxu0 }
 0x1ba   :  { %v673_v19 = vadd.f32 %v1064_v11, %v1044_v8 }
 0x1bb   :  { %v664_v17 = vpop.f32.mrf.mxu0 }
 0x1bc   :  { %v665_v23 = vadd.f32 %v664_v17, %v567_v10 }
 0x1d2   :  { %v1083_v12 = vpop.f32.mrf.mxu1 }
 0x1d3   :  { %v806_v15 = vadd.f32 %v1083_v12, %v670_v13 }
 0x1d4   :  { %v789_v18 = vpop.f32.mrf.mxu1 }
 0x1d5   :  { %v817_v20 = vadd.f32 %v940_v14, %v806_v15  ;;  %v804_v21 = vadd.f32 %v789_v18, %v662_v3 }
 0x1d6   :  { %v1084_v22 = vpop.f32.mrf.mxu1 }
 0x1d7   :  { %v821_v24 = vmax.f32 %v817_v20, 0.0  ;;  %v815_v25 = vadd.f32 %v940_v14, %v804_v21  ;;  %v807_v26 = vadd.f32 %v1084_v22, %v673_v19 }
 0x1d8   :  { %v792_v27 = vpop.f32.mrf.mxu1 }
 0x1d9   :  { %825 = vst [vmem:[%s1382_s5 + $0x10] sm:$0xff] %v821_v24  ;;  %v819_v28 = vmax.f32 %v815_v25, 0.0  ;;  %v818_v29 = vadd.f32 %v940_v14, %v807_v26  ;;  %v805_v30 = vadd.f32 %v792_v27, %v665_v23 }
 0x1db   :  { %823 = vst [vmem:[%s1382_s5] sm:$0xff] %v819_v28  ;;  %v822_v31 = vmax.f32 %v818_v29, 0.0  ;;  %v816_v32 = vadd.f32 %v940_v14, %v805_v30 }
 0x1dd   :  { %826 = vst [vmem:[%s1382_s5 + $0x18] sm:$0xff] %v822_v31  ;;  %v820_v34 = vmax.f32 %v816_v32, 0.0 }
 0x1df   :  { %824 = vst [vmem:[%s1382_s5 + $0x8] sm:$0xff] %v820_v34 }

</bundles_post_ra>
